<compile_context>
chip_gen: v7x
topology: tpu7x:2x2x1
jax: 0.10.0
libtpu: 0.0.40
codegen_flags: <defaults>
</compile_context>

<pallas_src>
import jax
import jax.numpy as jnp
from jax.experimental import pallas as pl
from jax.experimental.pallas import tpu as pltpu


def _round_up(x, m):
    return (x + m - 1) // m * m


def _conv_max_kernel(xt_ref, xt1_ref, w0_ref, w1_ref, b_ref, o_ref, acc_ref):
    """One conv position t for one batch-row chunk.

    xt_ref / xt1_ref : [P, Bt, Din] bf16  time slices t and t+1 of the SAME HBM array
    w0_ref / w1_ref  : [Din, Dp]    bf16  Conv1d taps (Dp = Dout padded to 128)
    b_ref            : [1, Dp]      f32
    o_ref            : [Bt, Dp]     f32   output rows for this chunk
    acc_ref          : [P*Bt, Dp]   f32   running max over conv positions
    """
    P, Bt, Din = xt_ref.shape
    Dp = w0_ref.shape[1]
    t = pl.program_id(1)

    @pl.when(t == 0)
    def _init():
        acc_ref[...] = jnp.full(acc_ref.shape, -jnp.inf, dtype=acc_ref.dtype)

    xt = xt_ref[...].reshape(P * Bt, Din)     # Bt multiple of 16 -> aligned merge
    xt1 = xt1_ref[...].reshape(P * Bt, Din)
    # Conv1d(kernel_size=2) at position t: both taps on the MXU, f32 accumulation.
    y = (jnp.dot(xt, w0_ref[...], preferred_element_type=jnp.float32)
         + jnp.dot(xt1, w1_ref[...], preferred_element_type=jnp.float32))
    # max_pool2d over time = running max, one step per grid iteration.
    acc_ref[...] = jnp.maximum(acc_ref[...], y)

    @pl.when(t == pl.num_programs(1) - 1)
    def _finalize():
        # torch.cat(outputs,-1).view(P,B,D).permute + max over the path axis:
        # rows were laid out (p', b') in the wrapper, so this is just a max over
        # the leading axis. Bias (per-channel constant) commutes with both maxes.
        acc = acc_ref[...].reshape(P, Bt, Dp)
        o_ref[...] = (jnp.max(acc, axis=0) + b_ref[...]).astype(o_ref.dtype)


def path_embedding_forward(path_input, path_type, emb_tables, conv_w, conv_b,
                           path_num, timestamp, *, b_tile=None):
    """
    path_input : int32 [B, path_num, timestamp]   indices into embedding rows
    path_type  : int32 [timestamp]                which embedding table per step
    emb_tables : f32   [n_type, vocab, in_dim]    the `type_embedding` tables
    conv_w     : f32   [out_dim, in_dim, 2]       nn.Conv1d weight
    conv_b     : f32   [out_dim]                  nn.Conv1d bias
    returns    : f32   [B, out_dim]
    """
    B = path_input.shape[0]
    P = path_num
    T = timestamp
    n_type, vocab, Din = emb_tables.shape
    Dout = conv_w.shape[0]
    assert T >= 2, "Conv1d(kernel_size=2) requires timestamp >= 2"

    # Padded sizes: batch rows to a multiple of 16 (bf16 sublane packing),
    # output channels to a multiple of 128 (lane-dense stores / full MXU N).
    B_pad = _round_up(B, 16)
    Dp = _round_up(Dout, 128)
    Bt = B_pad if b_tile is None else _round_up(min(b_tile, B_pad), 16)
    n_b = pl.cdiv(B_pad, Bt)
    B_pad = n_b * Bt

    # ---- glue: data-dependent embedding gather (plain JAX; see TODO at top) ----
    flat_tab = emb_tables.reshape(n_type * vocab, Din)
    # Indices in (t, b, p) order (only the tiny int32 tensor is transposed).
    idx_tbp = (path_type[:, None, None] * vocab
               + jnp.transpose(path_input, (2, 0, 1)))            # [T, B, P]
    # The PyTorch cat(outputs,-1).view(P, B, D) tail is exactly a flat
    # reinterpretation of the (b, p) order as (p', b'): bake it into the row
    # layout with a RESHAPE (deliberately not a transpose), so the second max
    # stage in-kernel is a plain leading-axis max on aligned blocks.
    idx_rows = idx_tbp.reshape(T, P, B)                           # [T, P, B]
    idx_rows = jnp.pad(idx_rows, ((0, 0), (0, 0), (0, B_pad - B)))  # pad rows -> sliced off later
    x = flat_tab[idx_rows].astype(jnp.bfloat16)                   # [T, P, B_pad, Din]

    # Conv1d weight taps + bias, output channels zero-padded to Dp.
    w0 = jnp.pad(conv_w[:, :, 0].T, ((0, 0), (0, Dp - Dout))).astype(jnp.bfloat16)
    w1 = jnp.pad(conv_w[:, :, 1].T, ((0, 0), (0, Dp - Dout))).astype(jnp.bfloat16)
    bias = jnp.pad(conv_b, (0, Dp - Dout)).reshape(1, Dp).astype(jnp.float32)

    # Grid: (batch-row chunks [parallel, v7x 2-TC sharding], conv position t [arbitrary]).
    # NOTE(v7x): re-derive Bt against 64 MiB physical VMEM; vmem_limit_bytes set
    # explicitly with headroom (this kernel's footprint is far below it).
    out = pl.pallas_call(
        _conv_max_kernel,
        out_shape=jax.ShapeDtypeStruct((B_pad, Dp), jnp.float32),
        grid=(n_b, T - 1),
        in_specs=[
            # two conv taps = two windows on the SAME activation array (no concat copy)
            pl.BlockSpec((None, P, Bt, Din), lambda ib, t: (t, 0, ib, 0)),
            pl.BlockSpec((None, P, Bt, Din), lambda ib, t: (t + 1, 0, ib, 0)),
            pl.BlockSpec((Din, Dp), lambda ib, t: (0, 0)),
            pl.BlockSpec((Din, Dp), lambda ib, t: (0, 0)),
            pl.BlockSpec((1, Dp), lambda ib, t: (0, 0)),
        ],
        out_specs=pl.BlockSpec((Bt, Dp), lambda ib, t: (ib, 0)),
        scratch_shapes=[pltpu.VMEM((P * Bt, Dp), jnp.float32)],
        compiler_params=pltpu.CompilerParams(
            dimension_semantics=("parallel", "arbitrary"),
            vmem_limit_bytes=32 * 1024 * 1024),
    )(x, x, w0, w1, bias)

    return out[:B, :Dout]


# ---------------------------------------------------------------------------
# Pure-JAX reference mirroring the PyTorch forward exactly (f32 throughout).
# ---------------------------------------------------------------------------
def reference_forward(path_input, path_type, emb_tables, conv_w, conv_b, P, T):
    B = path_input.shape[0]
    Dout = conv_w.shape[0]
    outs = []
    for i in range(P):
        paths = path_input[:, i, :]                                    # [B, T]
        xi = emb_tables[path_type[None, :], paths]                     # [B, T, Din]
        x0, x1 = xi[:, :-1, :], xi[:, 1:, :]
        y = x0 @ conv_w[:, :, 0].T + x1 @ conv_w[:, :, 1].T + conv_b   # [B, T-1, Dout]
        outs.append(jnp.max(y, axis=1))                                # [B, Dout]
    Mcat = jnp.concatenate(outs, axis=-1)                              # torch.cat(outputs, -1)
    v = Mcat.reshape(P, B, Dout)                                       # .view(P, B, Dout)
    return jnp.max(v, axis=0)                                          # permute + max_pool2d


if __name__ == "__main__":
    key = jax.random.PRNGKey(0)
    B, P, T = 4, 3, 8            # batch, path_num, timestamp
    Din = Dout = 32              # the module's asserts require in_dim == out_dim
    n_type, vocab = 2, 10

    k1, k2, k3, k4 = jax.random.split(key, 4)
    emb_tables = 0.1 * jax.random.normal(k1, (n_type, vocab, Din), jnp.float32)
    conv_w = 0.1 * jax.random.normal(k2, (Dout, Din, 2), jnp.float32)
    conv_b = 0.1 * jax.random.normal(k3, (Dout,), jnp.float32)
    path_input = jax.random.randint(k4, (B, P, T), 0, vocab, dtype=jnp.int32)
    path_type = jnp.array([t % n_type for t in range(T)], dtype=jnp.int32)

    out = path_embedding_forward(path_input, path_type, emb_tables,
                                 conv_w, conv_b, P, T)
    out = jax.block_until_ready(out)
    assert out.shape == (B, Dout), out.shape

    ref = reference_forward(path_input, path_type, emb_tables, conv_w, conv_b, P, T)
    # bf16 matmul operands with f32 accumulation -> loosened tolerance.
    assert jnp.allclose(out, ref, atol=2e-2, rtol=2e-2), \
        float(jnp.max(jnp.abs(out - ref)))

    print("KERNEL_OK")
</pallas_src>

<mosaic_0001>
module attributes {stable_mosaic.version = 11 : i64} {
  func.func @_conv_max_kernel(%arg0: i32, %arg1: i32, %arg2: memref<1x3x16x32xbf16, #tpu.memory_space<vmem>>, %arg3: memref<1x3x16x32xbf16, #tpu.memory_space<vmem>>, %arg4: memref<32x128xbf16, #tpu.memory_space<vmem>>, %arg5: memref<32x128xbf16, #tpu.memory_space<vmem>>, %arg6: memref<1x128xf32, #tpu.memory_space<vmem>>, %arg7: memref<16x128xf32, #tpu.memory_space<vmem>>, %arg8: memref<48x128xf32, #tpu.memory_space<vmem>>) attributes {dimension_semantics = [#tpu.dimension_semantics<parallel>, #tpu.dimension_semantics<arbitrary>], iteration_bounds = array<i64: 1, 7>, scalar_prefetch = 0 : i64, scratch_operands = 1 : i64, tpu.core_type = #tpu.core_type<tc>, window_params = [{transform_indices = @transform_0, window_bounds = array<i64: 1, 3, 16, 32>}, {transform_indices = @transform_1, window_bounds = array<i64: 1, 3, 16, 32>}, {pipeline_mode = #tpu.pipeline_mode<synchronous>, transform_indices = @transform_2, window_bounds = array<i64: 32, 128>}, {pipeline_mode = #tpu.pipeline_mode<synchronous>, transform_indices = @transform_3, window_bounds = array<i64: 32, 128>}, {pipeline_mode = #tpu.pipeline_mode<synchronous>, transform_indices = @transform_4, window_bounds = array<i64: 1, 128>}, {transform_indices = @transform_5, window_bounds = array<i64: 16, 128>}]} {
    %c0_i32 = arith.constant 0 : i32
    %0 = arith.cmpi eq, %arg1, %c0_i32 : i32
    %1 = arith.extui %0 : i1 to i32
    %c0_i32_0 = arith.constant 0 : i32
    %2 = arith.cmpi ne, %1, %c0_i32_0 : i32
    scf.if %2 {
      %cst_18 = arith.constant 0xFF800000 : f32
      %20 = vector.broadcast %cst_18 : f32 to vector<48x128xf32>
      %c0_19 = arith.constant 0 : index
      %c0_20 = arith.constant 0 : index
      %21 = vector.load %arg8[%c0_19, %c0_20] : memref<48x128xf32, #tpu.memory_space<vmem>>, vector<48x128xf32>
      tpu.vector_store %arg8[%c0_19, %c0_20], %20 {strides = array<i32>} : memref<48x128xf32, #tpu.memory_space<vmem>>, vector<48x128xf32>,
    } else {
    }
    %c0 = arith.constant 0 : index
    %c0_1 = arith.constant 0 : index
    %c0_2 = arith.constant 0 : index
    %c0_3 = arith.constant 0 : index
    %3 = vector.load %arg2[%c0, %c0_1, %c0_2, %c0_3] : memref<1x3x16x32xbf16, #tpu.memory_space<vmem>>, vector<1x3x16x32xbf16>
    %4 = vector.shape_cast %3 : vector<1x3x16x32xbf16> to vector<3x16x32xbf16>
    %5 = vector.shape_cast %4 : vector<3x16x32xbf16> to vector<48x32xbf16>
    %c0_4 = arith.constant 0 : index
    %c0_5 = arith.constant 0 : index
    %c0_6 = arith.constant 0 : index
    %c0_7 = arith.constant 0 : index
    %6 = vector.load %arg3[%c0_4, %c0_5, %c0_6, %c0_7] : memref<1x3x16x32xbf16, #tpu.memory_space<vmem>>, vector<1x3x16x32xbf16>
    %7 = vector.shape_cast %6 : vector<1x3x16x32xbf16> to vector<3x16x32xbf16>
    %8 = vector.shape_cast %7 : vector<3x16x32xbf16> to vector<48x32xbf16>
    %c0_8 = arith.constant 0 : index
    %c0_9 = arith.constant 0 : index
    %9 = vector.load %arg4[%c0_8, %c0_9] : memref<32x128xbf16, #tpu.memory_space<vmem>>, vector<32x128xbf16>
    %cst = arith.constant dense<0.000000e+00> : vector<48x128xf32>
    %10 = tpu.matmul %5, %9, %cst {dimension_numbers = #tpu.dot_dimension_numbers<[1], [0], [0], [1], [0, 0, 1, 1], [], []>} : vector<48x32xbf16>, vector<32x128xbf16>, vector<48x128xf32> -> vector<48x128xf32>
    %c0_10 = arith.constant 0 : index
    %c0_11 = arith.constant 0 : index
    %11 = vector.load %arg5[%c0_10, %c0_11] : memref<32x128xbf16, #tpu.memory_space<vmem>>, vector<32x128xbf16>
    %cst_12 = arith.constant dense<0.000000e+00> : vector<48x128xf32>
    %12 = tpu.matmul %8, %11, %cst_12 {dimension_numbers = #tpu.dot_dimension_numbers<[1], [0], [0], [1], [0, 0, 1, 1], [], []>} : vector<48x32xbf16>, vector<32x128xbf16>, vector<48x128xf32> -> vector<48x128xf32>
    %13 = arith.addf %10, %12 : vector<48x128xf32>
    %c0_13 = arith.constant 0 : index
    %c0_14 = arith.constant 0 : index
    %14 = vector.load %arg8[%c0_13, %c0_14] : memref<48x128xf32, #tpu.memory_space<vmem>>, vector<48x128xf32>
    %15 = arith.maximumf %14, %13 : vector<48x128xf32>
    %c0_15 = arith.constant 0 : index
    %c0_16 = arith.constant 0 : index
    %16 = vector.load %arg8[%c0_15, %c0_16] : memref<48x128xf32, #tpu.memory_space<vmem>>, vector<48x128xf32>
    tpu.vector_store %arg8[%c0_15, %c0_16], %15 {strides = array<i32>} : memref<48x128xf32, #tpu.memory_space<vmem>>, vector<48x128xf32>,
    %c6_i32 = arith.constant 6 : i32
    %17 = arith.cmpi eq, %arg1, %c6_i32 : i32
    %18 = arith.extui %17 : i1 to i32
    %c0_i32_17 = arith.constant 0 : i32
    %19 = arith.cmpi ne, %18, %c0_i32_17 : i32
    scf.if %19 {
      %c0_18 = arith.constant 0 : index
      %c0_19 = arith.constant 0 : index
      %20 = vector.load %arg8[%c0_18, %c0_19] : memref<48x128xf32, #tpu.memory_space<vmem>>, vector<48x128xf32>
      %21 = vector.shape_cast %20 : vector<48x128xf32> to vector<3x16x128xf32>
      %cst_20 = arith.constant dense<0xFF800000> : vector<16x128xf32>
      %22 = vector.multi_reduction <maximumf>, %21, %cst_20 [0] : vector<3x16x128xf32> to vector<16x128xf32>
      %c0_21 = arith.constant 0 : index
      %c0_22 = arith.constant 0 : index
      %23 = vector.load %arg6[%c0_21, %c0_22] : memref<1x128xf32, #tpu.memory_space<vmem>>, vector<1x128xf32>
      %24 = vector.broadcast %23 : vector<1x128xf32> to vector<16x128xf32>
      %25 = arith.addf %22, %24 : vector<16x128xf32>
      %c0_23 = arith.constant 0 : index
      %c0_24 = arith.constant 0 : index
      %26 = vector.load %arg7[%c0_23, %c0_24] : memref<16x128xf32, #tpu.memory_space<vmem>>, vector<16x128xf32>
      tpu.vector_store %arg7[%c0_23, %c0_24], %25 {strides = array<i32>} : memref<16x128xf32, #tpu.memory_space<vmem>>, vector<16x128xf32>,
    } else {
    }
    return
  }
  func.func @transform_0(%arg0: i32, %arg1: i32) -> (i32, i32, i32, i32) {
    %c0_i32 = arith.constant 0 : i32
    %c0_i32_0 = arith.constant 0 : i32
    %c0_i32_1 = arith.constant 0 : i32
    return %arg1, %c0_i32, %arg0, %c0_i32_0 : i32, i32, i32, i32
  }
  func.func @transform_1(%arg0: i32, %arg1: i32) -> (i32, i32, i32, i32) {
    %c1_i32 = arith.constant 1 : i32
    %0 = arith.addi %arg1, %c1_i32 : i32
    %c0_i32 = arith.constant 0 : i32
    %c0_i32_0 = arith.constant 0 : i32
    %c0_i32_1 = arith.constant 0 : i32
    return %0, %c0_i32, %arg0, %c0_i32_0 : i32, i32, i32, i32
  }
  func.func @transform_2(%arg0: i32, %arg1: i32) -> (i32, i32) {
    %c0_i32 = arith.constant 0 : i32
    %c0_i32_0 = arith.constant 0 : i32
    %c0_i32_1 = arith.constant 0 : i32
    return %c0_i32, %c0_i32_0 : i32, i32
  }
  func.func @transform_3(%arg0: i32, %arg1: i32) -> (i32, i32) {
    %c0_i32 = arith.constant 0 : i32
    %c0_i32_0 = arith.constant 0 : i32
    %c0_i32_1 = arith.constant 0 : i32
    return %c0_i32, %c0_i32_0 : i32, i32
  }
  func.func @transform_4(%arg0: i32, %arg1: i32) -> (i32, i32) {
    %c0_i32 = arith.constant 0 : i32
    %c0_i32_0 = arith.constant 0 : i32
    %c0_i32_1 = arith.constant 0 : i32
    return %c0_i32, %c0_i32_0 : i32, i32
  }
  func.func @transform_5(%arg0: i32, %arg1: i32) -> (i32, i32) {
    %c0_i32 = arith.constant 0 : i32
    %c0_i32_0 = arith.constant 0 : i32
    return %arg0, %c0_i32 : i32, i32
  }
}

</mosaic_0001>

<bundles_post_ra>
// kernel: tpu_custom_call.1
= control target key start
LH: loop header
LB: loop body
LE: loop exit
PB: predicated region body
PF: predicated region fallthrough
CT: control target
= control target key end

     0   :  { %s1550_s0 = inlined_call_operand.hbm [shape: bf16[8,3,16,32], index: 0, kind: input, shape index: {}]   ;;  %s1551_s1 = inlined_call_operand.hbm [shape: bf16[8,3,16,32], index: 1, kind: input, shape index: {}]   ;;  %s1552_s2 = inlined_call_operand.hbm [shape: bf16[32,128], index: 2, kind: input, shape index: {}]   ;;  %s1553_s3 = inlined_call_operand.hbm [shape: bf16[32,128], index: 3, kind: input, shape index: {}]   ;;  %s1554_s4 = inlined_call_operand.vmem [shape: f32[1,128], index: 4, kind: input, shape index: {}]   ;;  %s1555_s5 = inlined_call_operand.hbm [shape: f32[16,128], index: 5, kind: output, shape index: {}]  }
   0x1   :  { %1569 = sst [smem:[#allocation19_spill]] %s1550_s0 }
   0x2   :  { %1570 = sst [smem:[#allocation20_spill]] %s1552_s2 }
   0x3   :  { %1571 = sst [smem:[#allocation21_spill]] %s1553_s3 }
   0x4   :  { %10 = vsyncpa [#allocation4], 0 }
   0x5   :  { %12 = vsyncpa [#allocation4 + $0x1], 0 }
   0x6   :  { %13 = vsyncpa [#allocation7], 0 }
   0x7   :  { %15 = vsyncpa [#allocation7 + $0x1], 0 }
   0x8   :  { %16 = vsyncpa [#allocation10], 0 }
   0x9   :  { %17 = vsyncpa [#allocation5], 0  ;;  %s1207_s18 = smov 0   ;;  %s1209_s19 = smov 0  }
   0xa   :  { %s1211_s20 = smov 0   ;;  %s1213_s21 = smov 0  }
   0xb   :  { %s1215_s22 = smov 0   ;;  %s1217_s23 = smov 0  }
   0xc   :  { %s1219_s24 = smov 0   ;;  %s1221_s25 = smov 0  }
   0xd   :  { %s1223_s26 = smov 0  }
   0xe LB: > { %1572 = sst [smem:[#allocation17_spill]] %s1159_s25  ;;  %s1249_s27 = sadd.s32 4294967295, %s1163_s26   ;;  %s1163_s26 = sphi %s1223_s26, %s23_s26   ;;  %s1159_s25 = sphi %s1221_s25, %s1596_s25   ;;  %s1155_s24 = sphi %s1219_s24, %s1595_s24   ;;  %s1151_s23 = sphi %s1217_s23, %s1602_s23   ;;  %s1147_s22 = sphi %s1215_s22, %s1601_s22   ;;  %s1143_s21 = sphi %s1213_s21, %s1600_s21   ;;  %s1139_s20 = sphi %s1211_s20, %s1599_s20   ;;  %s1135_s19 = sphi %s1209_s19, %s1598_s19   ;;  %s1131_s18 = sphi %s1207_s18, %s1597_s18  }
   0xf   : > { %p57_p0 = scmp.ne.s32.totalorder %s1147_s22, %s1143_s21  ;;  %p1556_p1 = scmp.eq.s32.totalorder %s1249_s27, 0 }
  0x10   : > { %p87_p2 = scmp.ne.s32.totalorder %s1135_s19, %s1131_s18  ;;  %p716_p3 = scmp.ge.s32.totalorder %s1163_s26, 1 }
  0x11   : > { %p187_p4 = scmp.lt.s32.totalorder %s1163_s26, 8  ;;  %p1258_p5 = por %p1556_p1, %p57_p0 }
  0x12   : > { %p1264_p6 = por %p87_p2, %p1556_p1  ;;  %s1165_s6 = smov [#allocation8]  }
  0x13   : > { %s1573_s28 = scalar_select %p1258_p5, 1, 0 }
  0x14   : > { %s1574_s29 = scalar_select %p1264_p6, 1, 0 }
  0x15   : > { %p1268_p7 = pnand %p716_p3, %p187_p4  ;;  %s199_s7 = sshll.u32 %s1165_s6, 4  ;;  %s200_s7 = int_to_ptr.vmem [resolvable:$true] %s199_s7 }
  0x16   : > { %s1166_s9 = smov [#allocation9]   ;;  %s1577_s2 = sld [smem:[#allocation20_spill]] }
  0x17   : > { %s1575_s30 = scalar_select %p1268_p7, 1, 0 }
  0x18   : > { %p817_p8 = pneg %p1268_p7  ;;  %s212_s10 = sshll.u32 %s1166_s9, 4  ;;  %s213_s10 = int_to_ptr.vmem [resolvable:$true] %s212_s10 }
  0x1a   : > { %p1276_p9 = pnand %p817_p8, %p1556_p1 }
  0x1c   : > { %s930_s13 = scalar_lea.hbm %s1577_s2, 256  ;;  %p932_p11 = pneg %p1276_p9 }
  0x1d   : > { %p931_p10 = scmp.ne.s32.totalorder %s1577_s2, %s930_s13  ;;  %p937_p0 = scmp.lt.u32.totalorder %s930_s13, %s1577_s2 }
  0x1f   : > { %p933_p12 = pnand %p932_p11, %p931_p10 }
  0x21   : > { %p934_p13 = pneg %p933_p12 }
  0x23   : > { %p939_p2 = pnand %p937_p0, %p934_p13 }
  0x25   : > { %942 = shalt.err (!%p939_p2)
}
  0x26   : > { %s943_s18 = scalar_lea.vmem %s200_s7, 256  ;;  %p951_p1 = scmp.lt.s32.totalorder %s200_s7, %s200_s7 }
  0x27   : > { %p944_p3 = scmp.ne.s32.totalorder %s200_s7, %s943_s18  ;;  %p952_p6 = scmp.lt.s32.totalorder %s943_s18, %s943_s18 }
  0x29   : > { %p946_p4 = pnand %p944_p3, %p932_p11  ;;  %p953_p5 = por %p952_p6, %p951_p1 }
  0x2b   : > { %p947_p8 = pneg %p946_p4 }
  0x2d   : > { %p954_p7 = pnand %p953_p5, %p947_p8 }
  0x2f   : > { %957 = shalt.err (!%p954_p7)
}
  0x30   : > { %s1560_s21 = smov 64   ;;  %s1562_s6 = smov 4  }
  0x31   : > { %820 = dma.hbm_to_vmem [thread:$0]  (!%p1276_p9), %s1577_s2, 256, %s200_s7, [#allocation7], %s1560_s21, %s1560_s21, %s1562_s6  }
  0x32   : > { %s1578_s3 = sld [smem:[#allocation21_spill]] }
  0x38   : > { %s958_s14 = scalar_lea.hbm %s1578_s3, 256 }
  0x39   : > { %p959_p1 = scmp.ne.s32.totalorder %s1578_s3, %s958_s14  ;;  %p965_p7 = scmp.lt.u32.totalorder %s958_s14, %s1578_s3 }
  0x3b   : > { %p961_p5 = pnand %p959_p1, %p932_p11 }
  0x3d   : > { %p962_p6 = pneg %p961_p5 }
  0x3f   : > { %p967_p10 = pnand %p965_p7, %p962_p6 }
  0x41   : > { %970 = shalt.err (!%p967_p10)
}
  0x42   : > { %s971_s7 = scalar_lea.vmem %s213_s10, 256  ;;  %p979_p2 = scmp.lt.s32.totalorder %s213_s10, %s213_s10 }
  0x43   : > { %p972_p12 = scmp.ne.s32.totalorder %s213_s10, %s971_s7  ;;  %p980_p3 = scmp.lt.s32.totalorder %s971_s7, %s971_s7 }
  0x45   : > { %p974_p13 = pnand %p972_p12, %p932_p11  ;;  %p981_p4 = por %p980_p3, %p979_p2 }
  0x47   : > { %p975_p0 = pneg %p974_p13 }
  0x49   : > { %p982_p8 = pnand %p981_p4, %p975_p0 }
  0x4b   : > { %985 = shalt.err (!%p982_p8)
}
  0x4c   : > { %823 = dma.hbm_to_vmem [thread:$0]  (!%p1276_p9), %s1578_s3, 256, %s213_s10, [#allocation10], %s1560_s21, %s1560_s21, %s1562_s6  }
  0x4d   : > { %s32_s12 = sadd.s32 1, %s1159_s25  ;;  %s44_s8 = sadd.s32 1, %s1151_s23 }
  0x4e   : > { %p33_p11 = scmp.ge.s32.totalorder %s32_s12, 7  ;;  %p51_p1 = scmp.ne.s32.totalorder %s1151_s23, %s1147_s22 }
  0x4f   : > { %p1566_p5 = scmp.eq.s32.totalorder %s1163_s26, 0  ;;  %p1565_p6 = scmp.lt.s32.totalorder %s1163_s26, 7 }
  0x50   : > { %s1334_s13 = scalar_select %p33_p11, 0, %s32_s12  }
  0x51   : > { %p53_p7 = por %p1566_p5, %p51_p1  ;;  %s229_s14 = sand.u32 1, %s1151_s23  }
  0x52   : > { %1579 = sst [smem:[#allocation18_spill]] %s1334_s13  ;;  %s39_s15 = ssub.s32 %s1159_s25, %s1334_s13 }
  0x53   : > { %s68_s16 = sadd.s32 1, %s1334_s13  ;;  %p42_p10 = scmp.eq.s32.totalorder %s39_s15, 0 }
  0x54   : > { %s1342_s10 = ssub.s32 %s32_s12, %s68_s16  ;;  %s796_s18 = smul.u32 24, %s229_s14 }
  0x55   : > { %p72_p9 = scmp.eq.s32.totalorder %s1342_s10, 0  ;;  %p1350_p12 = pnand %p1565_p6, %p53_p7 }
  0x56   : > { %s1346_s17 = scalar_select %p42_p10, %s1151_s23, %s44_s8  }
  0x57   : > { %s1564_s9 = smul.u32 384, %s1159_s25  ;;  %s1581_s0 = sld [smem:[#allocation19_spill]] }
  0x58   : > { %s233_s12 = scalar_lea.vmem [#allocation3], %s796_s18  ;;  %s1364_s16 = scalar_lea.sflag [#allocation4], %s229_s14 }
  0x59   : > { %s242_s8 = sshll.u32 %s233_s12, 4  ;;  %p988_p0 = pneg %p1350_p12  ;;  %s1362_s8 = int_to_ptr.vmem [resolvable:$true] %s242_s8 }
  0x5d   : > { %s1360_s15 = scalar_lea.hbm %s1581_s0, %s1564_s9  ;;  %s991_s9 = scalar_lea.hbm %s1581_s0, 3072 }
  0x5e   : > { %s986_s6 = scalar_lea.hbm %s1360_s15, 384  ;;  %p992_p4 = scmp.lt.u32.totalorder %s1360_s15, %s1581_s0 }
  0x5f   : > { %p987_p13 = scmp.ne.s32.totalorder %s1360_s15, %s986_s6  ;;  %p993_p8 = scmp.lt.u32.totalorder %s991_s9, %s986_s6 }
  0x60   : > { %p995_p1 = scmp.lt.u32.totalorder %s986_s6, %s1360_s15 }
  0x61   : > { %p989_p2 = pnand %p988_p0, %p987_p13  ;;  %p994_p11 = por %p993_p8, %p992_p4 }
  0x63   : > { %p990_p3 = pneg %p989_p2  ;;  %p996_p7 = por %p995_p1, %p994_p11 }
  0x65   : > { %p997_p10 = pnand %p996_p7, %p990_p3 }
  0x67   : > { %1000 = shalt.err (!%p997_p10)
}
  0x68   : > { %s1001_s14 = scalar_lea.vmem %s1362_s8, 384  ;;  %s1169_s18 = smov [#allocation3]  }
  0x69   : > { %p1002_p13 = scmp.ne.s32.totalorder %s1362_s8, %s1001_s14  ;;  %s1006_s12 = sshll.u32 %s1169_s18, 4  ;;  %s1007_s12 = int_to_ptr.vmem [resolvable:$false] %s1006_s12 }
  0x6a   : > { %s1008_s2 = scalar_lea.vmem %s1007_s12, 768  ;;  %p1009_p5 = scmp.lt.s32.totalorder %s1362_s8, %s1007_s12 }
  0x6b   : > { %p1004_p2 = pnand %p1002_p13, %p988_p0  ;;  %p1010_p4 = scmp.lt.s32.totalorder %s1008_s2, %s1001_s14 }
  0x6d   : > { %p1005_p6 = pneg %p1004_p2  ;;  %p1011_p8 = por %p1010_p4, %p1009_p5 }
  0x6f   : > { %p1012_p11 = pnand %p1011_p8, %p1005_p6 }
  0x71   : > { %1015 = shalt.err (!%p1012_p11)
}
  0x72   : > { %s1582_s3 = smov 4   ;;  %s1583_s6 = smov 64  }
  0x73   : > { %827 = dma.hbm_to_vmem [thread:$0]  (!%p1350_p12), %s1360_s15, 384, %s1362_s8, %s1364_s16, %s1583_s6, %s1583_s6, %s1582_s3  }
  0x74   : > { %s74_s9 = sadd.s32 1, %s1139_s20  ;;  %p81_p5 = scmp.ne.s32.totalorder %s1139_s20, %s1135_s19 }
  0x75   : > { %s1401_s7 = scalar_select %p72_p9, %s1139_s20, %s74_s9  }
  0x76   : > { %p1584_p6 = scmp.eq.s32.totalorder %s1163_s26, 0  ;;  %s252_s21 = sand.u32 1, %s1163_s26  }
  0x77   : > { %s254_s11 = sand.u32 1, %s1139_s20   ;;  %s1585_s18 = smul.u32 384, %s1159_s25 }
  0x78   : > { %p83_p0 = por %p81_p5, %p1584_p6  ;;  %s798_s14 = smul.u32 24, %s254_s11 }
  0x79   : > { %s643_s0 = scalar_lea.hbm %s1551_s1, %s1585_s18  ;;  %p1586_p3 = scmp.lt.s32.totalorder %s1163_s26, 7 }
  0x7a   : > { %s1418_s10 = scalar_lea.hbm %s643_s0, 384  ;;  %s256_s15 = scalar_lea.vmem [#allocation6], %s798_s14 }
  0x7b   : > { %p1414_p1 = pnand %p1586_p3, %p83_p0  ;;  %s266_s8 = sshll.u32 %s256_s15, 4  ;;  %s1420_s8 = int_to_ptr.vmem [resolvable:$true] %s266_s8 }
  0x7c   : > { %s1422_s16 = scalar_lea.sflag [#allocation7], %s252_s21  ;;  %s1046_s9 = scalar_lea.hbm %s643_s0, 768 }
  0x7d   : > { %p1017_p9 = scmp.ne.s32.totalorder %s1418_s10, %s1046_s9  ;;  %p1018_p12 = pneg %p1414_p1 }
  0x7e   : > { %s1021_s12 = scalar_lea.hbm %s1551_s1, 3072  ;;  %p1022_p13 = scmp.lt.u32.totalorder %s1418_s10, %s1551_s1 }
  0x7f   : > { %p1019_p7 = pnand %p1018_p12, %p1017_p9  ;;  %p1023_p2 = scmp.lt.u32.totalorder %s1021_s12, %s1046_s9 }
  0x80   : > { %p1025_p8 = scmp.lt.u32.totalorder %s1046_s9, %s1418_s10 }
  0x81   : > { %p1020_p10 = pneg %p1019_p7  ;;  %p1024_p4 = por %p1023_p2, %p1022_p13 }
  0x83   : > { %p1026_p11 = por %p1025_p8, %p1024_p4 }
  0x85   : > { %p1027_p5 = pnand %p1026_p11, %p1020_p10 }
  0x87   : > { %1030 = shalt.err (!%p1027_p5)
}
  0x88   : > { %s1031_s0 = scalar_lea.vmem %s1420_s8, 384  ;;  %s1170_s21 = smov [#allocation6]  }
  0x89   : > { %p1032_p6 = scmp.ne.s32.totalorder %s1420_s8, %s1031_s0  ;;  %s1036_s14 = sshll.u32 %s1170_s21, 4  ;;  %s1037_s14 = int_to_ptr.vmem [resolvable:$false] %s1036_s14 }
  0x8a   : > { %s1038_s25 = scalar_lea.vmem %s1037_s14, 768  ;;  %p1039_p9 = scmp.lt.s32.totalorder %s1420_s8, %s1037_s14 }
  0x8b   : > { %p1034_p0 = pnand %p1032_p6, %p1018_p12  ;;  %p1040_p7 = scmp.lt.s32.totalorder %s1038_s25, %s1031_s0 }
  0x8d   : > { %p1035_p3 = pneg %p1034_p0  ;;  %p1041_p13 = por %p1040_p7, %p1039_p9 }
  0x8f   : > { %p1042_p2 = pnand %p1041_p13, %p1035_p3 }
  0x91   : > { %1045 = shalt.err (!%p1042_p2)
}
  0x92   : > { %830 = dma.hbm_to_vmem [thread:$0]  (!%p1414_p1), %s1418_s10, 384, %s1420_s8, %s1422_s16, %s1583_s6, %s1583_s6, %s1582_s3  }
  0x93   : > { %p1588_p12 = scmp.ne.s32.totalorder %s1575_s30, 0 }
  0x94   : > { %s280_s15 = sand.u32 (!%p1588_p12), 1, %s1147_s22   ;;  %p1589_p10 = scmp.ne.s32.totalorder (!%p1588_p12), %s1573_s28, 0 }
  0x95   : > { %278 = sbr.rel (%p1588_p12) target bundleno = 462 (0x1ce), region = 40  ;;  %s281_s11 = scalar_lea.sflag (!%p1588_p12), [#allocation4], %s280_s15 }
  0x96   : > { %s799_s9 = smul.u32 (!%p1588_p12), 24, %s280_s15 }
  0x98   : > { %s1455_s18 = scalar_lea.vmem (!%p1588_p12), [#allocation3], %s799_s9 }
  0x9c   : > { %1110 = dma.done.wait (%p1589_p10), %s281_s11, 384  }
  0x9d   : > { %1112 = vsyncadd (%p1589_p10), %s281_s11, 4294966912  ;;  %s289_s13 = sand.u32 1, %s1249_s27   ;;  %s291_s3 = sand.u32 1, %s1135_s19  }
  0x9e   : > { %s800_s6 = smul.u32 24, %s291_s3  ;;  %s290_s30 = scalar_lea.sflag [#allocation7], %s289_s13 }
  0x9f   : > { %p1590_p1 = scmp.ne.s32.totalorder %s1574_s29, 0 }
  0xa0   : > { %s1463_s10 = scalar_lea.vmem [#allocation6], %s800_s6 }
  0xa1   : > { %1114 = dma.done.wait (%p1590_p1), %s290_s30, 384  }
  0xa2   : > { %1116 = vsyncadd (%p1590_p1), %s290_s30, 4294966912  ;;  %p1591_p4 = scmp.eq.s32.totalorder %s1249_s27, 0 }
  0xa4   : > { %1118 = dma.done.wait (%p1591_p4), [#allocation7], 256   ;;  %p1592_p8 = pmov %p1591_p4 }
  0xa5   : > { %p1593_p11 = pmov %p1591_p4 }
  0xa6   : > { %1120 = vsyncadd (%p1592_p8), [#allocation7], 4294967040 }
  0xa7   : > { %1122 = dma.done.wait (%p1593_p11), [#allocation10], 256   ;;  %p1594_p5 = pmov %p1591_p4 }
  0xa8   : > { %p725_p6 = scmp.ne.s32.totalorder %s1155_s24, 0 }
  0xa9   : > { %1124 = vsyncadd (%p1594_p5), [#allocation10], 4294967040  ;;  %v1171_v0 = vmov (!%p725_p6), -inf  }
  0xaa   : > { %336 = sbr.rel (%p725_p6) target bundleno = 177 (0xb1), region = 60  ;;  %337 = vst [vmem:[#allocation2] sm:$0xff] (!%p725_p6), %v1171_v0  ;;  %338 = vst [vmem:[#allocation2 + $0x8] sm:$0xff] (!%p725_p6), %v1171_v0 }
  0xab   : > { %339 = vst [vmem:[#allocation2 + $0x10] sm:$0xff] (!%p725_p6), %v1171_v0  ;;  %340 = vst [vmem:[#allocation2 + $0x18] sm:$0xff] (!%p725_p6), %v1171_v0 }
  0xac   : > { %341 = vst [vmem:[#allocation2 + $0x20] sm:$0xff] (!%p725_p6), %v1171_v0  ;;  %342 = vst [vmem:[#allocation2 + $0x28] sm:$0xff] (!%p725_p6), %v1171_v0 }
  0xb1 PF: > { %v920_v1 = vld [vmem:[#allocation9] sm:$0xff]   ;;  %v1172_v2 = vmov 0.0   ;;  %v921_v3 = vld [vmem:[#allocation8] sm:$0xff]   ;;  %v922_v4 = vld [vmem:[#allocation9 + $0x8] sm:$0xff]   ;;  %vm1173_vm0 = vmmov 0   ;;  %vm390_vm1 = vcmask 261120  }
  0xb2   : > { %758 = vmatprep.subr.bf16.mxu1 %v1172_v2  ;;  %774 = vmatprep.subr.bf16.mxu0 %v1172_v2  ;;  %v923_v5 = vld [vmem:[#allocation8 + $0x8] sm:$0xff]   ;;  %v925_v7 = vld [vmem:[%s1455_s18] sm:$0xff]   ;;  %v926_v8 = vld [vmem:[%s1463_s10 + $0x8] sm:$0xff]   ;;  %p742_p0 = scmp.ne.s32.totalorder %s1155_s24, 6 }
  0xb3   : > { %759 = vmatpush3.bf16.msra.mxu1 %v920_v1  ;;  %762 = vmatprep.mubr.msk.bf16.mxu1 %vm1173_vm0, %v1172_v2  ;;  %v924_v6 = vld [vmem:[%s1463_s10] sm:$0xff]   ;;  %v927_v9 = vld [vmem:[%s1455_s18 + $0x8] sm:$0xff]   ;;  %v928_v10 = vld [vmem:[%s1463_s10 + $0x10] sm:$0xff]  }
  0xb4   : > { %775 = vmatpush3.bf16.msra.mxu0 %v921_v3  ;;  %760 = vmatprep.subr.bf16.mxu1 %v1172_v2  ;;  %v929_v11 = vld [vmem:[%s1455_s18 + $0x10] sm:$0xff]   ;;  %v551_v20 = vld [vmem:[#allocation2 + $0x8] sm:$0xff]  ;;  %v552_v28 = vld [vmem:[#allocation2 + $0x10] sm:$0xff] }
  0xb5   : > { %776 = vmatprep.subr.bf16.mxu0 %v1172_v2  ;;  %778 = vmatprep.mubr.msk.bf16.mxu0 %vm1173_vm0, %v1172_v2  ;;  %v550_v14 = vld [vmem:[#allocation2] sm:$0xff]  ;;  %v553_v34 = vld [vmem:[#allocation2 + $0x18] sm:$0xff]  ;;  %v555_v48 = vld [vmem:[#allocation2 + $0x28] sm:$0xff] }
  0xb6   : > { %v554_v42 = vld [vmem:[#allocation2 + $0x20] sm:$0xff] }
  0xb7   : > { %761 = vmatpush3.bf16.msra.mxu1 %v922_v4  ;;  %v743_v59 = vld [vmem:[%s1554_s4] ss:$0 sm:$0xff] (!%p742_p0) }
  0xb8   : > { %777 = vmatpush3.bf16.msra.mxu0 %v923_v5 }
  0xba   : > { %763 = vmatmul.mubr.msk.bf16.vlgmr.msra.gmra.mrb[0].mxu1 %vm390_vm1, %v924_v6 }
  0xbb   : > { %779 = vmatmul.mubr.msk.bf16.vlgmr.msra.gmra.mrb[0].mxu0 %vm390_vm1, %v925_v7  ;;  %766 = vmatprep.mubr.msk.bf16.mxu1 %vm1173_vm0, %v1172_v2 }
  0xbc   : > { %782 = vmatprep.mubr.msk.bf16.mxu0 %vm1173_vm0, %v1172_v2 }
  0xc2   : > { %767 = vmatmul.mubr.msk.bf16.gmra.mrb[4].mxu1 %vm390_vm1, %v926_v8 }
  0xc3   : > { %783 = vmatmul.mubr.msk.bf16.gmra.mrb[4].mxu0 %vm390_vm1, %v927_v9  ;;  %770 = vmatprep.mubr.msk.bf16.mxu1 %vm1173_vm0, %v1172_v2 }
  0xc4   : > { %786 = vmatprep.mubr.msk.bf16.mxu0 %vm1173_vm0, %v1172_v2 }
  0xca   : > { %771 = vmatmul.mubr.msk.bf16.gmra.mrb[8].mxu1 %vm390_vm1, %v928_v10 }
  0xcb   : > { %787 = vmatmul.mubr.msk.bf16.gmra.mrb[8].mxu0 %vm390_vm1, %v929_v11 }
 0x18d   : > { %v434_v12 = vpop.f32.mrb[0].mxu1 }
 0x18e   : > { %v527_v13 = vpop.f32.mrb[0].mxu0  ;;  %v764_v15 = vpop.f32.mrb[1].mxu1 }
 0x18f   : > { %v528_v16 = vadd.f32 %v527_v13, %v434_v12  ;;  %v780_v17 = vpop.f32.mrb[1].mxu0  ;;  %v437_v18 = vpop.f32.mrb[2].mxu1 }
 0x190   : > { %v530_v19 = vpop.f32.mrb[2].mxu0  ;;  %v765_v21 = vpop.f32.mrb[3].mxu1 }
 0x191   : > { %v556_v22 = vmax.f32 %v550_v14, %v528_v16  ;;  %v531_v23 = vadd.f32 %v530_v19, %v437_v18  ;;  %v781_v24 = vpop.f32.mrb[3].mxu0 }
 0x193   : > { %562 = vst [vmem:[#allocation2] sm:$0xff] %v556_v22  ;;  %v557_v25 = vmax.f32 %v551_v20, %v531_v23 }
 0x195   : > { %563 = vst [vmem:[#allocation2 + $0x8] sm:$0xff] %v557_v25  ;;  %v442_v26 = vpop.f32.mrb[4].mxu1 }
 0x196   : > { %v535_v27 = vpop.f32.mrb[4].mxu0  ;;  %v768_v29 = vpop.f32.mrb[5].mxu1 }
 0x197   : > { %v536_v30 = vadd.f32 %v535_v27, %v442_v26  ;;  %v784_v31 = vpop.f32.mrb[5].mxu0  ;;  %v445_v32 = vpop.f32.mrb[6].mxu1 }
 0x198   : > { %v538_v33 = vpop.f32.mrb[6].mxu0  ;;  %v769_v35 = vpop.f32.mrb[7].mxu1 }
 0x199   : > { %v558_v36 = vmax.f32 %v552_v28, %v536_v30  ;;  %v539_v37 = vadd.f32 %v538_v33, %v445_v32  ;;  %v785_v38 = vpop.f32.mrb[7].mxu0 }
 0x19a   : > { %v572_v54 = vld [vmem:[#allocation2] sm:$0xff] (!%p742_p0) }
 0x19b   : > { %564 = vst [vmem:[#allocation2 + $0x10] sm:$0xff] %v558_v36  ;;  %v559_v39 = vmax.f32 %v553_v34, %v539_v37 }
 0x19c   : > { %v573_v58 = vld [vmem:[#allocation2 + $0x8] sm:$0xff] (!%p742_p0) }
 0x19d   : > { %565 = vst [vmem:[#allocation2 + $0x18] sm:$0xff] %v559_v39  ;;  %v450_v40 = vpop.f32.mrb[8].mxu1 }
 0x19e   : > { %v543_v41 = vpop.f32.mrb[8].mxu0  ;;  %v772_v43 = vpop.f32.mrb[9].mxu1 }
 0x19f   : > { %v544_v44 = vadd.f32 %v543_v41, %v450_v40  ;;  %v788_v45 = vpop.f32.mrb[9].mxu0  ;;  %v453_v46 = vpop.f32.mrb[10].mxu1  ;;  %571 = sbr.rel (%p742_p0) target bundleno = 436 (0x1b4), region = 64 }
 0x1a0   : > { %v546_v47 = vpop.f32.mrb[10].mxu0  ;;  %v773_v49 = vpop.f32.mrb[11].mxu1 }
 0x1a1   : > { %v560_v50 = vmax.f32 %v554_v42, %v544_v44  ;;  %v547_v51 = vadd.f32 %v546_v47, %v453_v46  ;;  %v789_v52 = vpop.f32.mrb[11].mxu0 }
 0x1a2   : > { %v574_v55 = vld [vmem:[#allocation2 + $0x10] sm:$0xff] (!%p742_p0) }
 0x1a3   : > { %566 = vst [vmem:[#allocation2 + $0x20] sm:$0xff] %v560_v50  ;;  %v561_v53 = vmax.f32 %v555_v48, %v547_v51 }
 0x1a4   : > { %v575_v60 = vld [vmem:[#allocation2 + $0x18] sm:$0xff] (!%p742_p0) }
 0x1a5   : > { %567 = vst [vmem:[#allocation2 + $0x28] sm:$0xff] %v561_v53 }
 0x1aa   : > { %v576_v56 = vld [vmem:[#allocation2 + $0x20] sm:$0xff] }
 0x1ab   : > { %v578_v57 = vmax.f32 %v572_v54, %v576_v56 }
 0x1ac   : > { %v577_v61 = vld [vmem:[#allocation2 + $0x28] sm:$0xff] }
 0x1ad   : > { %v579_v62 = vmax.f32 %v578_v57, %v574_v55  ;;  %v580_v63 = vmax.f32 %v573_v58, %v577_v61 }
 0x1af   : > { %v589_v0 = vadd.f32 %v743_v59, %v579_v62  ;;  %v581_v1 = vmax.f32 %v580_v63, %v575_v60 }
 0x1b1   : > { %591 = vst [vmem:[#allocation11] sm:$0xff] %v589_v0  ;;  %v590_v2 = vadd.f32 %v743_v59, %v581_v1 }
 0x1b3   : > { %592 = vst [vmem:[#allocation11 + $0x8] sm:$0xff] %v590_v2 }
 0x1b4 PF: > { %p836_p3 = scmp.eq.s32.totalorder %s1249_s27, 6  ;;  %s1174_s24 = smov [#allocation11]  }
 0x1b5   : > { %s602_s8 = sshll.u32 %s1174_s24, 4  ;;  %s603_s8 = int_to_ptr.vmem [resolvable:$true] %s602_s8 }
 0x1b6   : > { %s1047_s16 = scalar_lea.vmem %s603_s8, 256  ;;  %p1054_p2 = scmp.lt.s32.totalorder %s603_s8, %s603_s8 }
 0x1b7   : > { %p1048_p9 = scmp.ne.s32.totalorder %s603_s8, %s1047_s16  ;;  %p1055_p12 = scmp.lt.s32.totalorder %s1047_s16, %s1047_s16 }
 0x1b9   : > { %p1049_p7 = pnand %p1048_p9, %p836_p3  ;;  %p1056_p10 = por %p1055_p12, %p1054_p2 }
 0x1bb   : > { %p1050_p13 = pneg %p1049_p7 }
 0x1bd   : > { %p1057_p1 = pnand %p1056_p10, %p1050_p13 }
 0x1bf   : > { %1060 = shalt.err (!%p1057_p1)
}
 0x1c0   : > { %s1061_s0 = scalar_lea.hbm %s1555_s5, 256 }
 0x1c1   : > { %p1062_p4 = scmp.ne.s32.totalorder %s1555_s5, %s1061_s0  ;;  %p1067_p5 = scmp.lt.u32.totalorder %s1061_s0, %s1555_s5 }
 0x1c3   : > { %p1063_p8 = pnand %p1062_p4, %p836_p3 }
 0x1c5   : > { %p1064_p11 = pneg %p1063_p8 }
 0x1c7   : > { %p1069_p6 = pnand %p1067_p5, %p1064_p11 }
 0x1c9   : > { %1072 = shalt.err (!%p1069_p6)
}
 0x1ca   : > { %s1175_s9 = smov 128   ;;  %s1176_s11 = smov 8  }
 0x1cb   : > { %814 = dma.vmem_to_hbm [thread:$0]  (%p836_p3), %s603_s8, 256, %s1555_s5, [#allocation5], %s1175_s9, %s1175_s9, %s1176_s11  }
 0x1cc   : > { %1126 = dma.done.wait (%p836_p3), [#allocation5], 256  }
 0x1cd   : > { %1128 = vsyncadd (%p836_p3), [#allocation5], 4294967040 }
 0x1ce PF: > { %s23_s26 = sadd.s32 1, %s1163_s26   ;;  %s1595_s24 = sld [smem:[#allocation17_spill]] }
 0x1cf   : > { %p20_p0 = scmp.ge.s32.totalorder %s23_s26, 9   ;;  %s1596_s25 = sld [smem:[#allocation18_spill]] }
 0x1d0   : > { %s1597_s18 = smov %s1135_s19  ;;  %s1598_s19 = smov %s1139_s20 }
 0x1d1   : > { %s1599_s20 = smov %s1401_s7  ;;  %s1600_s21 = smov %s1147_s22 }
 0x1d2   : > { %s1601_s22 = smov %s1151_s23  ;;  %s1602_s23 = smov %s1346_s17 }
 0x1d3   :  { %22 = sbr.rel (!%p20_p0) target bundleno = 14 (0xe), region = 107 }
 0x1da   :  { %618 = vsyncpa [#allocation4], 1 }
 0x1db   :  { %620 = vsyncpa [#allocation4 + $0x1], 1 }
 0x1dc   :  { %621 = vsyncpa [#allocation7], 1 }
 0x1dd   :  { %623 = vsyncpa [#allocation7 + $0x1], 1 }
 0x1de   :  { %624 = vsyncpa [#allocation10], 1 }
 0x1df   :  { %625 = vsyncpa [#allocation5], 1 }
 0x1e0   :  { %627 = vsyncpa [#allocation5 + $0x1], 1 }

</bundles_post_ra>
